<compile_context>
chip_gen: v7x
topology: tpu7x:2x2x1
jax: 0.10.0
libtpu: 0.0.40
codegen_flags: <defaults>
</compile_context>

<pallas_src>
import functools

import jax
import jax.numpy as jnp
from jax.experimental import pallas as pl
from jax.experimental.pallas import tpu as pltpu


# -----------------------------------------------------------------------------
# Kernels
# -----------------------------------------------------------------------------
def _action_tokenizer_kernel(x_ref, w1_ref, b1_ref, w2_ref, b2_ref, o_ref):
    """out = Linear2(tanh(Linear1(x)))  -- per batch tile."""
    x = x_ref[...].astype(jnp.float32)
    w1 = w1_ref[...]
    b1 = b1_ref[...]
    w2 = w2_ref[...]
    b2 = b2_ref[...]
    h = jnp.tanh(jnp.dot(x, w1, preferred_element_type=jnp.float32) + b1)
    y = jnp.dot(h, w2, preferred_element_type=jnp.float32) + b2
    o_ref[...] = y.astype(o_ref.dtype)


def _action_seq_fused_kernel(x_ref, w1_ref, b1_ref, w2_ref, b2_ref,
                             w3_ref, b3_ref, g_ref, beta_ref, o_ref):
    """Fused seq path per batch tile.

    x_ref:  (TILE_B, multistep, action_dim)
    w3_ref: (multistep, latent, d_seq)  -- W3 of the (d_seq, d_seq) Linear,
            reshaped so that w3_ref[t] are the rows of W3 that the t-th
            timestep's token contracts against.  Equivalent to
            concat(tok_0..tok_{m-1}) @ W3 without any in-kernel reshape.
    o_ref:  (TILE_B, d_seq)
    """
    tb = x_ref.shape[0]
    m = x_ref.shape[1]
    d = o_ref.shape[-1]

    # Hoist resident parameter loads out of the static timestep loop.
    w1 = w1_ref[...]
    b1 = b1_ref[...]
    w2 = w2_ref[...]
    b2 = b2_ref[...]

    y = jnp.zeros((tb, d), jnp.float32)
    for t in range(m):  # m is a small static constant -> fully unrolled
        xt = x_ref[:, t, :].astype(jnp.float32)                       # (tb, a)
        h = jnp.tanh(jnp.dot(xt, w1, preferred_element_type=jnp.float32) + b1)
        tok = jnp.dot(h, w2, preferred_element_type=jnp.float32) + b2  # (tb, latent)
        y = y + jnp.dot(tok, w3_ref[t], preferred_element_type=jnp.float32)
    y = y + b3_ref[...]

    # LayerNorm (biased variance, eps = 1e-5 like nn.LayerNorm) + Tanh.
    mean = jnp.mean(y, axis=-1, keepdims=True)
    var = jnp.mean((y - mean) ** 2, axis=-1, keepdims=True)
    y_hat = (y - mean) * jax.lax.rsqrt(var + 1e-5)
    o_ref[...] = jnp.tanh(y_hat * g_ref[...] + beta_ref[...]).astype(o_ref.dtype)


# -----------------------------------------------------------------------------
# pallas_call wrappers
# -----------------------------------------------------------------------------
def _round_up(x, m):
    return ((x + m - 1) // m) * m


def action_tokenizer(x, w1, b1, w2, b2, *, tile_n=512):
    """x: (N, action_dim) -> (N, latent_action_dim)."""
    n, a = x.shape
    hid = w1.shape[1]
    lat = w2.shape[1]
    tn = min(tile_n, _round_up(n, 8))
    grid = (pl.cdiv(n, tn),)

    flops = 2 * n * (a * hid + hid * lat)
    bytes_accessed = 4 * (n * a + n * lat
                          + w1.size + b1.size + w2.size + b2.size)

    return pl.pallas_call(
        _action_tokenizer_kernel,
        out_shape=jax.ShapeDtypeStruct((n, lat), jnp.float32),
        grid=grid,
        in_specs=[
            pl.BlockSpec((tn, a), lambda i: (i, 0)),        # tiled over batch
            pl.BlockSpec(w1.shape, lambda i: (0, 0)),       # resident weights
            pl.BlockSpec(b1.shape, lambda i: (0, 0)),
            pl.BlockSpec(w2.shape, lambda i: (0, 0)),
            pl.BlockSpec(b2.shape, lambda i: (0, 0)),
        ],
        out_specs=pl.BlockSpec((tn, lat), lambda i: (i, 0)),
        compiler_params=pltpu.CompilerParams(
            dimension_semantics=("parallel",)),
        cost_estimate=pl.CostEstimate(
            flops=flops,
            transcendentals=n * hid,
            bytes_accessed=bytes_accessed),
    )(x, w1, b1, w2, b2)


def action_seq_encode(x3, w1, b1, w2, b2, w3, b3, gamma, beta, *, tile_b=256):
    """Fused seq path.

    x3: (B, multistep, action_dim) -> (B, latent_action_dim * multistep)
    """
    b, m, a = x3.shape
    hid = w1.shape[1]
    lat = w2.shape[1]
    d = w3.shape[1]                       # d_seq = latent * multistep
    w3r = w3.reshape(m, lat, d)           # host/XLA-side reshape (free)

    tb = min(tile_b, _round_up(b, 8))
    grid = (pl.cdiv(b, tb),)

    flops = 2 * b * m * (a * hid + hid * lat) + 2 * b * d * d
    transcendentals = b * m * hid + b * d
    bytes_accessed = 4 * (b * m * a + b * d
                          + w1.size + b1.size + w2.size + b2.size
                          + w3.size + b3.size + gamma.size + beta.size)

    return pl.pallas_call(
        _action_seq_fused_kernel,
        out_shape=jax.ShapeDtypeStruct((b, d), jnp.float32),
        grid=grid,
        in_specs=[
            pl.BlockSpec((tb, m, a), lambda i: (i, 0, 0)),  # tiled over batch
            pl.BlockSpec(w1.shape, lambda i: (0, 0)),       # resident params
            pl.BlockSpec(b1.shape, lambda i: (0, 0)),
            pl.BlockSpec(w2.shape, lambda i: (0, 0)),
            pl.BlockSpec(b2.shape, lambda i: (0, 0)),
            pl.BlockSpec(w3r.shape, lambda i: (0, 0, 0)),
            pl.BlockSpec(b3.shape, lambda i: (0, 0)),
            pl.BlockSpec(gamma.shape, lambda i: (0, 0)),
            pl.BlockSpec(beta.shape, lambda i: (0, 0)),
        ],
        out_specs=pl.BlockSpec((tb, d), lambda i: (i, 0)),
        compiler_params=pltpu.CompilerParams(
            dimension_semantics=("parallel",)),
        cost_estimate=pl.CostEstimate(
            flops=flops,
            transcendentals=transcendentals,
            bytes_accessed=bytes_accessed),
    )(x3, w1, b1, w2, b2, w3r, b3, gamma, beta)


# -----------------------------------------------------------------------------
# Parameter construction (deterministic, mirrors weight_init: orthogonal W, 0 bias)
# -----------------------------------------------------------------------------
def _orthogonal(key, out_dim, in_dim, gain=1.0):
    """Orthogonal init on a (out, in) matrix, returned transposed as (in, out)."""
    a = jax.random.normal(key, (max(out_dim, in_dim), min(out_dim, in_dim)),
                          dtype=jnp.float32)
    q, r = jnp.linalg.qr(a)
    q = q * jnp.sign(jnp.diagonal(r))
    if out_dim < in_dim:
        q = q.T
    w = gain * q[:out_dim, :in_dim]             # torch layout (out, in)
    return jnp.asarray(w.T, dtype=jnp.float32)  # kernel layout (in, out)


def init_action_encoding_params(key, action_dim, latent_action_dim, multistep):
    k1, k2, k3 = jax.random.split(key, 3)
    d_seq = latent_action_dim * multistep
    params = {
        # action_tokenizer: Linear(action_dim, 64) -> Tanh -> Linear(64, latent)
        "w1": _orthogonal(k1, 64, action_dim),
        "b1": jnp.zeros((1, 64), jnp.float32),
        "w2": _orthogonal(k2, latent_action_dim, 64),
        "b2": jnp.zeros((1, latent_action_dim), jnp.float32),
        # action_seq_tokenizer: Linear(d_seq, d_seq) -> LayerNorm(d_seq) -> Tanh
        "w3": _orthogonal(k3, d_seq, d_seq),
        "b3": jnp.zeros((1, d_seq), jnp.float32),
        "ln_g": jnp.ones((1, d_seq), jnp.float32),
        "ln_b": jnp.zeros((1, d_seq), jnp.float32),
    }
    return params


# -----------------------------------------------------------------------------
# Module-equivalent forward
# -----------------------------------------------------------------------------
@functools.partial(jax.jit, static_argnames=("seq",))
def action_encoding_forward(params, action, seq=False):
    if seq:
        # action: (B, multistep, action_dim)  -> single fused kernel.
        return action_seq_encode(action,
                                 params["w1"], params["b1"],
                                 params["w2"], params["b2"],
                                 params["w3"], params["b3"],
                                 params["ln_g"], params["ln_b"])
    # action: (B, action_dim)
    return action_tokenizer(action, params["w1"], params["b1"],
                            params["w2"], params["b2"])


# pure-JAX reference for a sanity check
def _reference(params, action, seq=False):
    def tok(x):
        h = jnp.tanh(x @ params["w1"] + params["b1"])
        return h @ params["w2"] + params["b2"]

    if seq:
        b = action.shape[0]
        t = tok(action.reshape(-1, action.shape[-1])).reshape(b, -1)
        y = t @ params["w3"] + params["b3"]
        mu = jnp.mean(y, axis=-1, keepdims=True)
        var = jnp.mean((y - mu) ** 2, axis=-1, keepdims=True)
        y = (y - mu) / jnp.sqrt(var + 1e-5)
        return jnp.tanh(y * params["ln_g"] + params["ln_b"])
    return tok(action)


# -----------------------------------------------------------------------------
if __name__ == "__main__":
    action_dim = 6
    latent_action_dim = 16
    multistep = 4
    batch = 8

    key = jax.random.PRNGKey(0)
    kp, ka, ks = jax.random.split(key, 3)

    params = init_action_encoding_params(kp, action_dim, latent_action_dim, multistep)

    # seq=False path: (batch, action_dim)
    act_single = jax.random.normal(ka, (batch, action_dim), dtype=jnp.float32)
    out_single = action_encoding_forward(params, act_single, seq=False)
    jax.block_until_ready(out_single)

    # seq=True path: (batch, multistep, action_dim)
    act_seq = jax.random.normal(ks, (batch, multistep, action_dim), dtype=jnp.float32)
    out_seq = action_encoding_forward(params, act_seq, seq=True)
    jax.block_until_ready(out_seq)

    ref_single = _reference(params, act_single, seq=False)
    ref_seq = _reference(params, act_seq, seq=True)
    assert out_single.shape == (batch, latent_action_dim)
    assert out_seq.shape == (batch, latent_action_dim * multistep)
    assert jnp.allclose(out_single, ref_single, atol=1e-5, rtol=1e-5)
    assert jnp.allclose(out_seq, ref_seq, atol=1e-4, rtol=1e-4)

    print("KERNEL_OK")
</pallas_src>

<mosaic_0001>
module attributes {stable_mosaic.version = 11 : i64} {
  func.func @_action_tokenizer_kernel(%arg0: i32, %arg1: memref<8x6xf32, #tpu.memory_space<vmem>>, %arg2: memref<6x64xf32, #tpu.memory_space<vmem>>, %arg3: memref<1x64xf32, #tpu.memory_space<vmem>>, %arg4: memref<64x16xf32, #tpu.memory_space<vmem>>, %arg5: memref<1x16xf32, #tpu.memory_space<vmem>>, %arg6: memref<8x16xf32, #tpu.memory_space<vmem>>) attributes {dimension_semantics = [#tpu.dimension_semantics<parallel>], iteration_bounds = array<i64: 1>, scalar_prefetch = 0 : i64, scratch_operands = 0 : i64, tpu.core_type = #tpu.core_type<tc>, window_params = [{transform_indices = @transform_0, window_bounds = array<i64: 8, 6>}, {pipeline_mode = #tpu.pipeline_mode<synchronous>, transform_indices = @transform_1, window_bounds = array<i64: 6, 64>}, {pipeline_mode = #tpu.pipeline_mode<synchronous>, transform_indices = @transform_2, window_bounds = array<i64: 1, 64>}, {pipeline_mode = #tpu.pipeline_mode<synchronous>, transform_indices = @transform_3, window_bounds = array<i64: 64, 16>}, {pipeline_mode = #tpu.pipeline_mode<synchronous>, transform_indices = @transform_4, window_bounds = array<i64: 1, 16>}, {transform_indices = @transform_5, window_bounds = array<i64: 8, 16>}]} {
    %c0 = arith.constant 0 : index
    %c0_0 = arith.constant 0 : index
    %0 = vector.load %arg1[%c0, %c0_0] : memref<8x6xf32, #tpu.memory_space<vmem>>, vector<8x6xf32>
    %c0_1 = arith.constant 0 : index
    %c0_2 = arith.constant 0 : index
    %1 = vector.load %arg2[%c0_1, %c0_2] : memref<6x64xf32, #tpu.memory_space<vmem>>, vector<6x64xf32>
    %c0_3 = arith.constant 0 : index
    %c0_4 = arith.constant 0 : index
    %2 = vector.load %arg3[%c0_3, %c0_4] : memref<1x64xf32, #tpu.memory_space<vmem>>, vector<1x64xf32>
    %c0_5 = arith.constant 0 : index
    %c0_6 = arith.constant 0 : index
    %3 = vector.load %arg4[%c0_5, %c0_6] : memref<64x16xf32, #tpu.memory_space<vmem>>, vector<64x16xf32>
    %c0_7 = arith.constant 0 : index
    %c0_8 = arith.constant 0 : index
    %4 = vector.load %arg5[%c0_7, %c0_8] : memref<1x16xf32, #tpu.memory_space<vmem>>, vector<1x16xf32>
    %cst = arith.constant dense<0.000000e+00> : vector<8x64xf32>
    %5 = tpu.matmul %0, %1, %cst {dimension_numbers = #tpu.dot_dimension_numbers<[1], [0], [0], [1], [0, 0, 1, 1], [], []>} : vector<8x6xf32>, vector<6x64xf32>, vector<8x64xf32> -> vector<8x64xf32>
    %6 = vector.broadcast %2 : vector<1x64xf32> to vector<8x64xf32>
    %7 = arith.addf %5, %6 : vector<8x64xf32>
    %8 = math.tanh %7 : vector<8x64xf32>
    %cst_9 = arith.constant dense<0.000000e+00> : vector<8x16xf32>
    %9 = tpu.matmul %8, %3, %cst_9 {dimension_numbers = #tpu.dot_dimension_numbers<[1], [0], [0], [1], [0, 0, 1, 1], [], []>} : vector<8x64xf32>, vector<64x16xf32>, vector<8x16xf32> -> vector<8x16xf32>
    %10 = vector.broadcast %4 : vector<1x16xf32> to vector<8x16xf32>
    %11 = arith.addf %9, %10 : vector<8x16xf32>
    %c0_10 = arith.constant 0 : index
    %c0_11 = arith.constant 0 : index
    %12 = vector.load %arg6[%c0_10, %c0_11] : memref<8x16xf32, #tpu.memory_space<vmem>>, vector<8x16xf32>
    tpu.vector_store %arg6[%c0_10, %c0_11], %11 {strides = array<i32>} : memref<8x16xf32, #tpu.memory_space<vmem>>, vector<8x16xf32>,
    return
  }
  func.func @transform_0(%arg0: i32) -> (i32, i32) {
    %c0_i32 = arith.constant 0 : i32
    %c0_i32_0 = arith.constant 0 : i32
    return %arg0, %c0_i32 : i32, i32
  }
  func.func @transform_1(%arg0: i32) -> (i32, i32) {
    %c0_i32 = arith.constant 0 : i32
    %c0_i32_0 = arith.constant 0 : i32
    %c0_i32_1 = arith.constant 0 : i32
    return %c0_i32, %c0_i32_0 : i32, i32
  }
  func.func @transform_2(%arg0: i32) -> (i32, i32) {
    %c0_i32 = arith.constant 0 : i32
    %c0_i32_0 = arith.constant 0 : i32
    %c0_i32_1 = arith.constant 0 : i32
    return %c0_i32, %c0_i32_0 : i32, i32
  }
  func.func @transform_3(%arg0: i32) -> (i32, i32) {
    %c0_i32 = arith.constant 0 : i32
    %c0_i32_0 = arith.constant 0 : i32
    %c0_i32_1 = arith.constant 0 : i32
    return %c0_i32, %c0_i32_0 : i32, i32
  }
  func.func @transform_4(%arg0: i32) -> (i32, i32) {
    %c0_i32 = arith.constant 0 : i32
    %c0_i32_0 = arith.constant 0 : i32
    %c0_i32_1 = arith.constant 0 : i32
    return %c0_i32, %c0_i32_0 : i32, i32
  }
  func.func @transform_5(%arg0: i32) -> (i32, i32) {
    %c0_i32 = arith.constant 0 : i32
    %c0_i32_0 = arith.constant 0 : i32
    return %arg0, %c0_i32 : i32, i32
  }
}

</mosaic_0001>

<bundles_post_ra>
// kernel: action_encoding_forward.1
= control target key start
LH: loop header
LB: loop body
LE: loop exit
PB: predicated region body
PF: predicated region fallthrough
CT: control target
= control target key end

     0   :  { %vm43_vm0 = vcmask 1045504   ;;  %v296_v2 = vmov 0.0   ;;  %vm297_vm1 = vmmov 0   ;;  %vm39_vm2 = vcmask 48128   ;;  %s378_s0 = inlined_call_operand.vmem [shape: f32[8,6], index: 0, kind: input, shape index: {}]   ;;  %s379_s1 = inlined_call_operand.vmem [shape: f32[6,64], index: 1, kind: input, shape index: {}]   ;;  %s380_s2 = inlined_call_operand.vmem [shape: f32[1,64], index: 2, kind: input, shape index: {}]   ;;  %s381_s3 = inlined_call_operand.vmem [shape: f32[64,16], index: 3, kind: input, shape index: {}]   ;;  %s382_s4 = inlined_call_operand.vmem [shape: f32[1,16], index: 4, kind: input, shape index: {}]   ;;  %s383_s5 = inlined_call_operand.hbm [shape: f32[8,16], index: 5, kind: output, shape index: {}]  }
   0x1   :  { %v22_v0 = vld [vmem:[%s379_s1] sm:$0x3f]  ;;  %230 = vmatprep.subr.mxu0 %v296_v2  ;;  %232 = vmatprep.mubr.msk.f32.mxu0 %vm297_vm1, %v296_v2  ;;  %v25_v4 = vld [vmem:[%s381_s3 + $0x8] sm:$0xff]  ;;  %v298_v5 = vmov 0.0|0.0  }
   0x2   :  { %v21_v1 = vld [vmem:[%s378_s0] sm:$0xff]  ;;  %231 = vmatpush3.msk.msra.mxu0 %vm43_vm0, %v22_v0  ;;  %254 = vmatprep.subr.bf16.mxu1 %v298_v5 }
   0x3   :  { %v24_v3 = vld [vmem:[%s381_s3] sm:$0xff] }
   0x4   :  { %v255_v6 = vpack.c.bf16 %v25_v4, %v24_v3 }
   0x5   :  { %10 = vsyncpa [#allocation3], 0  ;;  %233 = vmatmul.mubr.msk.f32.vlgmr.msra.gmra.mrb[0].mxu0 %vm39_vm2, %v21_v1  ;;  %251 = vmatprep.mubr.msk.f32.mxu1 %vm297_vm1, %v296_v2  ;;  %v26_v7 = vld [vmem:[%s381_s3 + $0x10] sm:$0xff]  ;;  %v27_v8 = vld [vmem:[%s381_s3 + $0x18] sm:$0xff]  ;;  %vm124_vm3 = vcmask 523264   ;;  %vm198_vm4 = vcmask 130048  }
   0x6   :  { %256 = vmatpush3.bf16.msra.mxu1 %v255_v6  ;;  %v258_v9 = vpack.c.bf16 %v27_v8, %v26_v7  ;;  %v28_v10 = vld [vmem:[%s381_s3 + $0x20] sm:$0xff]  ;;  %v29_v11 = vld [vmem:[%s381_s3 + $0x28] sm:$0xff]  ;;  %v30_v13 = vld [vmem:[%s381_s3 + $0x30] sm:$0xff] }
   0x7   :  { %257 = vmatprep.subr.bf16.mxu1 %v298_v5  ;;  %v261_v12 = vpack.c.bf16 %v29_v11, %v28_v10  ;;  %v31_v14 = vld [vmem:[%s381_s3 + $0x38] sm:$0xff]  ;;  %v214_v16 = vld [vmem:[%s380_s2] ss:$0 sm:$0xff]  ;;  %s299_s3 = smov [#allocation2]  }
   0x8   :  { %v264_v15 = vpack.c.bf16 %v31_v14, %v30_v13  ;;  %v217_v21 = vld [vmem:[%s382_s4] ss:$0 sm:$0xff]  ;;  %s206_s15 = sshll.u32 %s299_s3, 4  ;;  %s207_s15 = int_to_ptr.vmem [resolvable:$true] %s206_s15 }
   0x9   :  { %s272_s2 = scalar_lea.vmem %s207_s15, 128  ;;  %p277_p1 = scmp.lt.s32.totalorder %s207_s15, %s207_s15 }
   0xa   :  { %259 = vmatpush3.bf16.msra.mxu1 %v258_v9  ;;  %p273_p0 = scmp.ne.s32.totalorder %s207_s15, %s272_s2  ;;  %p278_p2 = scmp.lt.s32.totalorder %s272_s2, %s272_s2 }
   0xb   :  { %260 = vmatprep.subr.bf16.mxu1 %v298_v5 }
   0xc   :  { %p279_p3 = por %p278_p2, %p277_p1 }
   0xe   :  { %262 = vmatpush3.bf16.msra.mxu1 %v261_v12  ;;  %p280_p4 = pnand %p279_p3, %p273_p0 }
   0xf   :  { %263 = vmatprep.subr.bf16.mxu1 %v298_v5 }
  0x12   :  { %265 = vmatpush3.bf16.msra.mxu1 %v264_v15 }
  0xd8   :  { %v113_v17 = vpop.f32.mrb[0].mxu0 }
  0xd9   :  { %v114_v18 = vadd.f32 %v214_v16, %v113_v17  ;;  %v234_v19 = vpop.f32.mrb[1].mxu0 }
  0xdb   :  { %270 = vtanh.f32 %v114_v18 }
  0xe5   :  { %v271_v20 = vpop.eup %270 }
  0xe6   :  { %252 = vmatmul.mubr.msk.f32.vlgmr.msra.gmra.mrb[0].mxu1 %vm124_vm3, %v271_v20 }
 0x1b9   :  { %v194_v22 = vpop.f32.mrb[0].mxu1 }
 0x1ba   :  { %v195_v23 = vadd.f32 %v217_v21, %v194_v22  ;;  %v253_v24 = vpop.f32.mrb[1].mxu1 }
 0x1bc   :  { %199 = vst.msk [vmem:[#allocation2] sm:$0xff] %vm198_vm4, %v195_v23 }
 0x1bd   :  { %283 = shalt.err (!%p280_p4)
}
 0x1be   :  { %s284_s18 = scalar_lea.hbm %s383_s5, 128 }
 0x1bf   :  { %p285_p5 = scmp.ne.s32.totalorder %s383_s5, %s284_s18  ;;  %p288_p6 = scmp.lt.u32.totalorder %s284_s18, %s383_s5 }
 0x1c1   :  { %p290_p7 = pnand %p288_p6, %p285_p5 }
 0x1c3   :  { %293 = shalt.err (!%p290_p7)
}
 0x1c4   :  { %209 = dma.vmem_to_hbm [thread:$0]  %s207_s15, 128, %s383_s5, [#allocation3]  }
 0x1c5   :  { %294 = dma.done.wait [#allocation3], 128  }
 0x1c6   :  { %295 = vsyncadd [#allocation3], 4294967168 }
 0x1c7   :  { %213 = vsyncpa [#allocation3], 1 }

</bundles_post_ra>
